<compile_context>
chip_gen: v7x
topology: tpu7x:2x2x1
jax: 0.10.0
libtpu: 0.0.40
codegen_flags: <defaults>
</compile_context>

<pallas_src>
import functools
import math

import jax
import jax.numpy as jnp
from jax.experimental import pallas as pl
from jax.experimental.pallas import tpu as pltpu


def _round_up(x, m):
    return ((x + m - 1) // m) * m


def _lora_kernel(scale_ref, x_ref, wd_ref, bd_ref, wu_ref, bu_ref, *rest,
                 apply_dropout):
    if apply_dropout:
        mask_ref, o_ref = rest
    else:
        (o_ref,) = rest

    # down projection (MXU, f32 accumulation) + bias + ReLU (VPU)
    h = jnp.dot(x_ref[...], wd_ref[...], preferred_element_type=jnp.float32)
    h = jnp.maximum(h + bd_ref[...], 0.0)          # (tm, A_pad) + (1, A_pad)

    # inverted dropout: mask already contains {0, 1/(1-p)} values
    if apply_dropout:
        # TODO(synk): RNG stream differs from torch's dropout RNG (unavoidable),
        # but the statistics (keep prob, 1/(1-p) rescale) match exactly.
        h = h * mask_ref[...].astype(jnp.float32)

    # up projection + bias, then scale; feed the MXU in the I/O dtype
    y = jnp.dot(h.astype(x_ref.dtype), wu_ref[...],
                preferred_element_type=jnp.float32)
    y = (y + bu_ref[...]) * scale_ref[0]           # (tm, H_pad) + (1, H_pad)
    o_ref[...] = y.astype(o_ref.dtype)


def lora_adapter_forward(x, w_down, b_down, w_up, b_up, scale,
                         *, dropout_p=0.0, training=False, seed=0, tm=None):
    """x: (..., H).  w_down: (H, A), b_down: (A,), w_up: (A, H), b_up: (H,).

    `scale` may be a Python float (lora_alpha) or a 1-element array (the
    learnable-scale case when lora_alpha == -1 in the PyTorch module).
    """
    H, A = w_down.shape
    assert w_up.shape == (A, H)
    orig_shape = x.shape
    x2 = x.reshape(-1, H)
    M = x2.shape[0]
    dtype = x2.dtype
    itemsize = jnp.dtype(dtype).itemsize

    apply_dropout = bool(training) and float(dropout_p) > 0.0

    # Lane-dense padding: LoRA rank A (typically 8-64) and H up to 128-mult.
    A_pad = _round_up(A, 128)
    H_pad = _round_up(H, 128)

    # Row tile: largest power-of-two tile (<=512) whose double-buffered x/out
    # (and mask) tiles + weights + f32 intermediates fit a v7x-safe VMEM budget.
    budget = 40 * 1024 * 1024
    fixed = 2 * 2 * H_pad * A_pad * itemsize + 8 * (A_pad + H_pad)
    per_row = 2 * 2 * H_pad * itemsize + 4 * (A_pad + H_pad)
    if apply_dropout:
        per_row += 2 * A_pad * itemsize            # double-buffered mask tile
    if tm is None:
        tm = 512
        while tm > 16 and fixed + tm * per_row > budget:
            tm //= 2
    tm = max(16, min(tm, _round_up(M, 16)))
    M_pad = _round_up(M, tm)

    est = fixed + tm * per_row
    vmem_limit = min(max(int(1.25 * est) + (4 << 20), 32 << 20), 64 << 20)

    def _pad2(a, r, c):
        pr, pc = r - a.shape[0], c - a.shape[1]
        if pr or pc:
            a = jnp.pad(a, ((0, pr), (0, pc)))
        return a

    xp = _pad2(x2, M_pad, H_pad)
    wd = _pad2(w_down.astype(dtype), H_pad, A_pad)
    wu = _pad2(w_up.astype(dtype), A_pad, H_pad)
    bd = _pad2(b_down.reshape(1, A).astype(jnp.float32), 1, A_pad)
    bu = _pad2(b_up.reshape(1, H).astype(jnp.float32), 1, H_pad)

    scale_arr = jnp.asarray(scale, dtype=jnp.float32).reshape(1)

    kernel = functools.partial(_lora_kernel, apply_dropout=apply_dropout)

    flops = 4 * M_pad * H_pad * A_pad                      # two matmuls
    bytes_accessed = (2 * M_pad * H_pad * itemsize         # x in + y out
                      + 2 * H_pad * A_pad * itemsize       # both weights
                      + 4 * (A_pad + H_pad))               # biases

    in_specs = [
        pl.BlockSpec(memory_space=pltpu.SMEM),             # scale
        pl.BlockSpec((tm, H_pad), lambda i: (i, 0)),       # x rows
        pl.BlockSpec((H_pad, A_pad), lambda i: (0, 0)),    # W_down
        pl.BlockSpec((1, A_pad), lambda i: (0, 0)),        # b_down
        pl.BlockSpec((A_pad, H_pad), lambda i: (0, 0)),    # W_up
        pl.BlockSpec((1, H_pad), lambda i: (0, 0)),        # b_up
    ]
    args = [scale_arr, xp, wd, bd, wu, bu]

    if apply_dropout:
        keep = jax.random.bernoulli(jax.random.PRNGKey(seed),
                                    1.0 - float(dropout_p), (M_pad, A_pad))
        inv_keep = jnp.asarray(1.0 / (1.0 - float(dropout_p)), dtype=dtype)
        mask = keep.astype(dtype) * inv_keep               # {0, 1/(1-p)}
        in_specs.append(pl.BlockSpec((tm, A_pad), lambda i: (i, 0)))
        args.append(mask)
        bytes_accessed += M_pad * A_pad * itemsize

    out = pl.pallas_call(
        kernel,
        out_shape=jax.ShapeDtypeStruct((M_pad, H_pad), dtype),
        grid_spec=pl.GridSpec(
            grid=(M_pad // tm,),
            in_specs=in_specs,
            out_specs=pl.BlockSpec((tm, H_pad), lambda i: (i, 0)),
        ),
        compiler_params=pltpu.CompilerParams(
            dimension_semantics=("parallel",),
            vmem_limit_bytes=vmem_limit),
        cost_estimate=pl.CostEstimate(
            flops=flops, transcendentals=0, bytes_accessed=bytes_accessed),
    )(*args)

    return out[:M, :H].reshape(orig_shape)


if __name__ == "__main__":
    # Small shapes consistent with the module: tokens of hidden_size features.
    batch, seq, hidden_size, adapter_dim = 2, 8, 32, 8
    lora_alpha = 4.0          # -> scale is the constant lora_alpha
    dropout_p = 0.1

    key = jax.random.PRNGKey(0)
    kx, kd, ku = jax.random.split(key, 3)

    x = jax.random.normal(kx, (batch, seq, hidden_size), dtype=jnp.float32)

    # Deterministic parameter init.  PyTorch's __init__ uses
    # kaiming_uniform_(a=sqrt(5)) for down.weight (== U(-1/sqrt(H), 1/sqrt(H)))
    # and zeros for up.weight / biases; up.weight gets a small nonzero init
    # here so the fused kernel output is non-trivial to verify.
    bound = 1.0 / math.sqrt(hidden_size)
    w_down = jax.random.uniform(kd, (hidden_size, adapter_dim),
                                minval=-bound, maxval=bound, dtype=jnp.float32)
    b_down = jnp.zeros((adapter_dim,), dtype=jnp.float32)
    w_up = 0.02 * jax.random.normal(ku, (adapter_dim, hidden_size),
                                    dtype=jnp.float32)
    b_up = jnp.zeros((hidden_size,), dtype=jnp.float32)

    # Pure-JAX reference (eval mode: dropout is the identity, as in torch).
    h_ref = jnp.maximum(x.reshape(-1, hidden_size) @ w_down + b_down, 0.0)
    y_ref = ((h_ref @ w_up + b_up) * lora_alpha).reshape(x.shape)

    # 1) f32 eval-mode check (tight tolerance).
    out_f32 = lora_adapter_forward(x, w_down, b_down, w_up, b_up, lora_alpha,
                                   dropout_p=dropout_p, training=False)
    out_f32 = jax.block_until_ready(out_f32)
    assert out_f32.shape == x.shape
    assert jnp.allclose(out_f32, y_ref, atol=1e-5, rtol=1e-5)

    # 2) bf16 I/O path (intended production dtype): loose tolerance.
    out_bf16 = lora_adapter_forward(
        x.astype(jnp.bfloat16), w_down.astype(jnp.bfloat16), b_down,
        w_up.astype(jnp.bfloat16), b_up, lora_alpha,
        dropout_p=dropout_p, training=False)
    out_bf16 = jax.block_until_ready(out_bf16)
    assert out_bf16.dtype == jnp.bfloat16
    assert jnp.allclose(out_bf16.astype(jnp.float32), y_ref,
                        atol=3e-2, rtol=3e-2)

    # 3) training-mode check: fused-dropout kernel must equal the pure-JAX
    #    reference computed with the same host-generated mask.
    out_train = lora_adapter_forward(x, w_down, b_down, w_up, b_up, lora_alpha,
                                     dropout_p=dropout_p, training=True, seed=7)
    out_train = jax.block_until_ready(out_train)
    assert out_train.shape == x.shape
    assert bool(jnp.all(jnp.isfinite(out_train)))
    M = batch * seq
    A_pad = _round_up(adapter_dim, 128)
    keep_ref = jax.random.bernoulli(jax.random.PRNGKey(7), 1.0 - dropout_p,
                                    (M, A_pad))[:, :adapter_dim]
    h_drop = h_ref * keep_ref.astype(jnp.float32) / (1.0 - dropout_p)
    y_train_ref = ((h_drop @ w_up + b_up) * lora_alpha).reshape(x.shape)
    assert jnp.allclose(out_train, y_train_ref, atol=1e-5, rtol=1e-5)

    print("KERNEL_OK")
</pallas_src>

<mosaic_0001>
module attributes {stable_mosaic.version = 11 : i64} {
  func.func @_lora_kernel(%arg0: i32, %arg1: memref<1xf32, #tpu.memory_space<smem>>, %arg2: memref<16x128xf32, #tpu.memory_space<vmem>>, %arg3: memref<128x128xf32, #tpu.memory_space<vmem>>, %arg4: memref<1x128xf32, #tpu.memory_space<vmem>>, %arg5: memref<128x128xf32, #tpu.memory_space<vmem>>, %arg6: memref<1x128xf32, #tpu.memory_space<vmem>>, %arg7: memref<16x128xf32, #tpu.memory_space<vmem>>) attributes {dimension_semantics = [#tpu.dimension_semantics<parallel>], iteration_bounds = array<i64: 1>, scalar_prefetch = 0 : i64, scratch_operands = 0 : i64, tpu.core_type = #tpu.core_type<tc>, window_params = [{transform_indices = @transform_0, window_bounds = array<i64: 1>}, {transform_indices = @transform_1, window_bounds = array<i64: 16, 128>}, {pipeline_mode = #tpu.pipeline_mode<synchronous>, transform_indices = @transform_2, window_bounds = array<i64: 128, 128>}, {pipeline_mode = #tpu.pipeline_mode<synchronous>, transform_indices = @transform_3, window_bounds = array<i64: 1, 128>}, {pipeline_mode = #tpu.pipeline_mode<synchronous>, transform_indices = @transform_4, window_bounds = array<i64: 128, 128>}, {pipeline_mode = #tpu.pipeline_mode<synchronous>, transform_indices = @transform_5, window_bounds = array<i64: 1, 128>}, {transform_indices = @transform_6, window_bounds = array<i64: 16, 128>}]} {
    %c0 = arith.constant 0 : index
    %c0_0 = arith.constant 0 : index
    %0 = vector.load %arg2[%c0, %c0_0] : memref<16x128xf32, #tpu.memory_space<vmem>>, vector<16x128xf32>
    %c0_1 = arith.constant 0 : index
    %c0_2 = arith.constant 0 : index
    %1 = vector.load %arg3[%c0_1, %c0_2] : memref<128x128xf32, #tpu.memory_space<vmem>>, vector<128x128xf32>
    %cst = arith.constant dense<0.000000e+00> : vector<16x128xf32>
    %2 = tpu.matmul %0, %1, %cst {dimension_numbers = #tpu.dot_dimension_numbers<[1], [0], [0], [1], [0, 0, 1, 1], [], []>} : vector<16x128xf32>, vector<128x128xf32>, vector<16x128xf32> -> vector<16x128xf32>
    %c0_3 = arith.constant 0 : index
    %c0_4 = arith.constant 0 : index
    %3 = vector.load %arg4[%c0_3, %c0_4] : memref<1x128xf32, #tpu.memory_space<vmem>>, vector<1x128xf32>
    %4 = vector.broadcast %3 : vector<1x128xf32> to vector<16x128xf32>
    %5 = arith.addf %2, %4 : vector<16x128xf32>
    %cst_5 = arith.constant 0.000000e+00 : f32
    %6 = vector.broadcast %cst_5 : f32 to vector<16x128xf32>
    %7 = arith.maximumf %5, %6 : vector<16x128xf32>
    %c0_6 = arith.constant 0 : index
    %c0_7 = arith.constant 0 : index
    %8 = vector.load %arg5[%c0_6, %c0_7] : memref<128x128xf32, #tpu.memory_space<vmem>>, vector<128x128xf32>
    %cst_8 = arith.constant dense<0.000000e+00> : vector<16x128xf32>
    %9 = tpu.matmul %7, %8, %cst_8 {dimension_numbers = #tpu.dot_dimension_numbers<[1], [0], [0], [1], [0, 0, 1, 1], [], []>} : vector<16x128xf32>, vector<128x128xf32>, vector<16x128xf32> -> vector<16x128xf32>
    %c0_9 = arith.constant 0 : index
    %c0_10 = arith.constant 0 : index
    %10 = vector.load %arg6[%c0_9, %c0_10] : memref<1x128xf32, #tpu.memory_space<vmem>>, vector<1x128xf32>
    %11 = vector.broadcast %10 : vector<1x128xf32> to vector<16x128xf32>
    %12 = arith.addf %9, %11 : vector<16x128xf32>
    %c0_11 = arith.constant 0 : index
    %13 = memref.load %arg1[%c0_11] : memref<1xf32, #tpu.memory_space<smem>>
    %14 = vector.broadcast %13 : f32 to vector<16x128xf32>
    %15 = arith.mulf %12, %14 : vector<16x128xf32>
    %c0_12 = arith.constant 0 : index
    %c0_13 = arith.constant 0 : index
    %16 = vector.load %arg7[%c0_12, %c0_13] : memref<16x128xf32, #tpu.memory_space<vmem>>, vector<16x128xf32>
    tpu.vector_store %arg7[%c0_12, %c0_13], %15 {strides = array<i32>} : memref<16x128xf32, #tpu.memory_space<vmem>>, vector<16x128xf32>,
    return
  }
  func.func @transform_0(%arg0: i32) -> i32 {
    %c0_i32 = arith.constant 0 : i32
    %c0_i32_0 = arith.constant 0 : i32
    return %c0_i32 : i32
  }
  func.func @transform_1(%arg0: i32) -> (i32, i32) {
    %c0_i32 = arith.constant 0 : i32
    %c0_i32_0 = arith.constant 0 : i32
    return %arg0, %c0_i32 : i32, i32
  }
  func.func @transform_2(%arg0: i32) -> (i32, i32) {
    %c0_i32 = arith.constant 0 : i32
    %c0_i32_0 = arith.constant 0 : i32
    %c0_i32_1 = arith.constant 0 : i32
    return %c0_i32, %c0_i32_0 : i32, i32
  }
  func.func @transform_3(%arg0: i32) -> (i32, i32) {
    %c0_i32 = arith.constant 0 : i32
    %c0_i32_0 = arith.constant 0 : i32
    %c0_i32_1 = arith.constant 0 : i32
    return %c0_i32, %c0_i32_0 : i32, i32
  }
  func.func @transform_4(%arg0: i32) -> (i32, i32) {
    %c0_i32 = arith.constant 0 : i32
    %c0_i32_0 = arith.constant 0 : i32
    %c0_i32_1 = arith.constant 0 : i32
    return %c0_i32, %c0_i32_0 : i32, i32
  }
  func.func @transform_5(%arg0: i32) -> (i32, i32) {
    %c0_i32 = arith.constant 0 : i32
    %c0_i32_0 = arith.constant 0 : i32
    %c0_i32_1 = arith.constant 0 : i32
    return %c0_i32, %c0_i32_0 : i32, i32
  }
  func.func @transform_6(%arg0: i32) -> (i32, i32) {
    %c0_i32 = arith.constant 0 : i32
    %c0_i32_0 = arith.constant 0 : i32
    return %arg0, %c0_i32 : i32, i32
  }
}

</mosaic_0001>

<bundles_post_ra>
// kernel: tpu_custom_call.1
= control target key start
LH: loop header
LB: loop body
LE: loop exit
PB: predicated region body
PF: predicated region fallthrough
CT: control target
= control target key end

     0   :  { %12 = vsyncpa [#allocation4], 0  ;;  %s679_s0 = inlined_call_operand.<no memory space> [shape: f32[1], index: 0, kind: input, shape index: {}]   ;;  %s680_s1 = inlined_call_operand.hbm [shape: f32[16,128], index: 1, kind: input, shape index: {}]   ;;  %s681_s2 = inlined_call_operand.hbm [shape: f32[128,128], index: 2, kind: input, shape index: {}]   ;;  %s682_s3 = inlined_call_operand.vmem [shape: f32[1,128], index: 3, kind: input, shape index: {}]   ;;  %s683_s4 = inlined_call_operand.hbm [shape: f32[128,128], index: 4, kind: input, shape index: {}]   ;;  %s684_s5 = inlined_call_operand.vmem [shape: f32[1,128], index: 5, kind: input, shape index: {}]   ;;  %s685_s6 = inlined_call_operand.hbm [shape: f32[16,128], index: 6, kind: output, shape index: {}]  }
   0x1   :  { %13 = vsyncpa [#allocation7], 0 }
   0x2   :  { %14 = vsyncpa [#allocation5], 0  ;;  %s562_s21 = smov [#allocation6]   ;;  %s563_s23 = smov [#allocation3]  }
   0x3   :  { %s34_s22 = sshll.u32 %s562_s21, 4  ;;  %s22_s24 = sshll.u32 %s563_s23, 4  ;;  %s35_s22 = int_to_ptr.vmem [resolvable:$true] %s34_s22  ;;  %s603_s24 = int_to_ptr.vmem [resolvable:$true] %s22_s24 }
   0x4   :  { %s468_s27 = scalar_lea.hbm %s681_s2, 2048 }
   0x5   :  { %p469_p0 = scmp.ne.s32.totalorder %s681_s2, %s468_s27  ;;  %p472_p1 = scmp.lt.u32.totalorder %s468_s27, %s681_s2 }
   0x7   :  { %p474_p2 = pnand %p472_p1, %p469_p0 }
   0x9   :  { %477 = shalt.err (!%p474_p2)
}
   0xa   :  { %s478_s8 = scalar_lea.vmem %s35_s22, 2048  ;;  %p483_p4 = scmp.lt.s32.totalorder %s35_s22, %s35_s22 }
   0xb   :  { %p479_p3 = scmp.ne.s32.totalorder %s35_s22, %s478_s8  ;;  %p484_p5 = scmp.lt.s32.totalorder %s478_s8, %s478_s8 }
   0xd   :  { %p485_p6 = por %p484_p5, %p483_p4 }
   0xf   :  { %p486_p7 = pnand %p485_p6, %p479_p3 }
  0x11   :  { %489 = shalt.err (!%p486_p7)
}
  0x12   :  { %s564_s9 = smov 128   ;;  %s565_s10 = smov 8  }
  0x13   :  { %40 = dma.hbm_to_vmem [thread:$0]  %s681_s2, 2048, %s35_s22, [#allocation7], %s564_s9, %s564_s9, %s565_s10  }
  0x14   :  { %s490_s15 = scalar_lea.hbm %s680_s1, 256 }
  0x15   :  { %p491_p8 = scmp.ne.s32.totalorder %s680_s1, %s490_s15  ;;  %p494_p9 = scmp.lt.u32.totalorder %s490_s15, %s680_s1 }
  0x17   :  { %p496_p10 = pnand %p494_p9, %p491_p8 }
  0x19   :  { %499 = shalt.err (!%p496_p10)
}
  0x1a   :  { %s500_s20 = scalar_lea.vmem %s603_s24, 256  ;;  %p505_p12 = scmp.lt.s32.totalorder %s603_s24, %s603_s24 }
  0x1b   :  { %p501_p11 = scmp.ne.s32.totalorder %s603_s24, %s500_s20  ;;  %p506_p13 = scmp.lt.s32.totalorder %s500_s20, %s500_s20 }
  0x1d   :  { %p507_p0 = por %p506_p13, %p505_p12 }
  0x1f   :  { %p508_p1 = pnand %p507_p0, %p501_p11 }
  0x21   :  { %511 = shalt.err (!%p508_p1)
}
  0x22   :  { %28 = dma.hbm_to_vmem [thread:$0]  %s680_s1, 256, %s603_s24, [#allocation4], %s564_s9, %s564_s9, %s565_s10  }
  0x23   :  { %s566_s22 = smov [#allocation8]   ;;  %s512_s27 = scalar_lea.hbm %s683_s4, 2048 }
  0x24   :  { %s48_s23 = sshll.u32 %s566_s22, 4  ;;  %p513_p2 = scmp.ne.s32.totalorder %s683_s4, %s512_s27  ;;  %s49_s23 = int_to_ptr.vmem [resolvable:$true] %s48_s23 }
  0x25   :  { %p516_p3 = scmp.lt.u32.totalorder %s512_s27, %s683_s4 }
  0x27   :  { %p518_p4 = pnand %p516_p3, %p513_p2 }
  0x29   :  { %521 = shalt.err (!%p518_p4)
}
  0x2a   :  { %s522_s8 = scalar_lea.vmem %s49_s23, 2048  ;;  %p527_p6 = scmp.lt.s32.totalorder %s49_s23, %s49_s23 }
  0x2b   :  { %p523_p5 = scmp.ne.s32.totalorder %s49_s23, %s522_s8  ;;  %p528_p7 = scmp.lt.s32.totalorder %s522_s8, %s522_s8 }
  0x2d   :  { %p529_p8 = por %p528_p7, %p527_p6 }
  0x2f   :  { %p530_p9 = pnand %p529_p8, %p523_p5 }
  0x31   :  { %533 = shalt.err (!%p530_p9)
}
  0x32   :  { %54 = dma.hbm_to_vmem [thread:$0]  %s683_s4, 2048, %s49_s23, [#allocation7], %s564_s9, %s564_s9, %s565_s10  }
  0x33   :  { %556 = dma.done.wait [#allocation4], 256  }
  0x34   :  { %557 = vsyncadd [#allocation4], 4294967040 }
  0x35   :  { %558 = dma.done.wait [#allocation7], 4096  }
  0x36   :  { %559 = vsyncadd [#allocation7], 4294963200  ;;  %v68_v0 = vld [vmem:[#allocation6] sm:$0xff]  ;;  %v69_v1 = vld [vmem:[#allocation6 + $0x8] sm:$0xff]  ;;  %v267_v59 = vstv %s679_s0 }
  0x37   :  { %v70_v2 = vld [vmem:[#allocation6 + $0x10] sm:$0xff]  ;;  %v398_v3 = vpack.c.bf16 %v69_v1, %v68_v0  ;;  %v71_v4 = vld [vmem:[#allocation6 + $0x18] sm:$0xff]  ;;  %v72_v6 = vld [vmem:[#allocation6 + $0x20] sm:$0xff] }
  0x38   :  { %v402_v5 = vpack.c.bf16 %v71_v4, %v70_v2  ;;  %v73_v7 = vld [vmem:[#allocation6 + $0x28] sm:$0xff]  ;;  %v74_v9 = vld [vmem:[#allocation6 + $0x30] sm:$0xff]  ;;  %v75_v10 = vld [vmem:[#allocation6 + $0x38] sm:$0xff] }
  0x39   :  { %399 = vmatprep.subr.bf16.mxu0 %v398_v3  ;;  %v406_v8 = vpack.c.bf16 %v73_v7, %v72_v6  ;;  %v66_v11 = vld [vmem:[#allocation3] sm:$0xff]  ;;  %v168_v12 = vld [vmem:[#allocation8] sm:$0xff]  ;;  %v169_v13 = vld [vmem:[#allocation8 + $0x8] sm:$0xff]  ;;  %v410_v20 = vpack.c.bf16 %v75_v10, %v74_v9 }
  0x3a   :  { %401 = vmatpush3.bf16.msra.mxu0 %v398_v3  ;;  %360 = vmatprep.mubr.f32.mxu0 %v66_v11  ;;  %v170_v14 = vld [vmem:[#allocation8 + $0x10] sm:$0xff]  ;;  %v430_v15 = vpack.c.bf16 %v169_v13, %v168_v12  ;;  %v171_v16 = vld [vmem:[#allocation8 + $0x18] sm:$0xff]  ;;  %v172_v18 = vld [vmem:[#allocation8 + $0x20] sm:$0xff] }
  0x3b   :  { %403 = vmatprep.subr.bf16.mxu0 %v402_v5  ;;  %v434_v17 = vpack.c.bf16 %v171_v16, %v170_v14  ;;  %v173_v19 = vld [vmem:[#allocation8 + $0x28] sm:$0xff]  ;;  %v76_v21 = vld [vmem:[#allocation6 + $0x40] sm:$0xff]  ;;  %v174_v24 = vld [vmem:[#allocation8 + $0x30] sm:$0xff] }
  0x3c   :  { %431 = vmatprep.subr.bf16.mxu1 %v430_v15  ;;  %v77_v22 = vld [vmem:[#allocation6 + $0x48] sm:$0xff]  ;;  %v438_v23 = vpack.c.bf16 %v173_v19, %v172_v18  ;;  %v175_v25 = vld [vmem:[#allocation8 + $0x38] sm:$0xff]  ;;  %v78_v27 = vld [vmem:[#allocation6 + $0x50] sm:$0xff] }
  0x3d   :  { %433 = vmatpush3.bf16.msra.mxu1 %v430_v15  ;;  %v414_v26 = vpack.c.bf16 %v77_v22, %v76_v21  ;;  %v79_v28 = vld [vmem:[#allocation6 + $0x58] sm:$0xff]  ;;  %v442_v29 = vpack.c.bf16 %v175_v25, %v174_v24  ;;  %v176_v30 = vld [vmem:[#allocation8 + $0x40] sm:$0xff]  ;;  %v177_v31 = vld [vmem:[#allocation8 + $0x48] sm:$0xff] }
  0x3e   :  { %405 = vmatpush3.bf16.msra.mxu0 %v402_v5  ;;  %435 = vmatprep.subr.bf16.mxu1 %v434_v17  ;;  %v418_v32 = vpack.c.bf16 %v79_v28, %v78_v27  ;;  %v80_v33 = vld [vmem:[#allocation6 + $0x60] sm:$0xff]  ;;  %v81_v34 = vld [vmem:[#allocation6 + $0x68] sm:$0xff]  ;;  %v446_v35 = vpack.c.bf16 %v177_v31, %v176_v30  ;;  %v178_v36 = vld [vmem:[#allocation8 + $0x50] sm:$0xff] }
  0x3f   :  { %407 = vmatprep.subr.bf16.mxu0 %v406_v8  ;;  %v179_v37 = vld [vmem:[#allocation8 + $0x58] sm:$0xff]  ;;  %v422_v38 = vpack.c.bf16 %v81_v34, %v80_v33  ;;  %v82_v39 = vld [vmem:[#allocation6 + $0x70] sm:$0xff]  ;;  %v180_v42 = vld [vmem:[#allocation8 + $0x60] sm:$0xff] }
  0x40   :  { %v83_v40 = vld [vmem:[#allocation6 + $0x78] sm:$0xff]  ;;  %v450_v41 = vpack.c.bf16 %v179_v37, %v178_v36  ;;  %v181_v43 = vld [vmem:[#allocation8 + $0x68] sm:$0xff]  ;;  %v182_v47 = vld [vmem:[#allocation8 + $0x70] sm:$0xff] }
  0x41   :  { %437 = vmatpush3.bf16.msra.mxu1 %v434_v17  ;;  %v426_v44 = vpack.c.bf16 %v83_v40, %v82_v39  ;;  %v454_v45 = vpack.c.bf16 %v181_v43, %v180_v42  ;;  %v67_v46 = vld [vmem:[#allocation3 + $0x8] sm:$0xff]  ;;  %v290_v50 = vld [vmem:[%s682_s3] ss:$0 sm:$0xff]  ;;  %s567_s3 = smov [#allocation9]  }
  0x42   :  { %409 = vmatpush3.bf16.msra.mxu0 %v406_v8  ;;  %439 = vmatprep.subr.bf16.mxu1 %v438_v23  ;;  %v183_v48 = vld [vmem:[#allocation8 + $0x78] sm:$0xff]  ;;  %v291_v57 = vld [vmem:[%s684_s5] ss:$0 sm:$0xff]  ;;  %s277_s16 = sshll.u32 %s567_s3, 4  ;;  %s278_s16 = int_to_ptr.vmem [resolvable:$true] %s277_s16 }
  0x43   :  { %411 = vmatprep.subr.bf16.mxu0 %v410_v20  ;;  %v458_v49 = vpack.c.bf16 %v183_v48, %v182_v47  ;;  %s534_s17 = scalar_lea.vmem %s278_s16, 256  ;;  %p539_p11 = scmp.lt.s32.totalorder %s278_s16, %s278_s16 }
  0x44   :  { %p535_p10 = scmp.ne.s32.totalorder %s278_s16, %s534_s17  ;;  %p540_p12 = scmp.lt.s32.totalorder %s534_s17, %s534_s17 }
  0x45   :  { %441 = vmatpush3.bf16.msra.mxu1 %v438_v23 }
  0x46   :  { %413 = vmatpush3.bf16.msra.mxu0 %v410_v20  ;;  %443 = vmatprep.subr.bf16.mxu1 %v442_v29  ;;  %p541_p13 = por %p540_p12, %p539_p11 }
  0x47   :  { %415 = vmatprep.subr.bf16.mxu0 %v414_v26 }
  0x48   :  { %p542_p0 = pnand %p541_p13, %p535_p10 }
  0x49   :  { %445 = vmatpush3.bf16.msra.mxu1 %v442_v29 }
  0x4a   :  { %417 = vmatpush3.bf16.msra.mxu0 %v414_v26  ;;  %447 = vmatprep.subr.bf16.mxu1 %v446_v35 }
  0x4b   :  { %419 = vmatprep.subr.bf16.mxu0 %v418_v32 }
  0x4d   :  { %449 = vmatpush3.bf16.msra.mxu1 %v446_v35 }
  0x4e   :  { %421 = vmatpush3.bf16.msra.mxu0 %v418_v32  ;;  %451 = vmatprep.subr.bf16.mxu1 %v450_v41 }
  0x4f   :  { %423 = vmatprep.subr.bf16.mxu0 %v422_v38 }
  0x51   :  { %453 = vmatpush3.bf16.msra.mxu1 %v450_v41 }
  0x52   :  { %425 = vmatpush3.bf16.msra.mxu0 %v422_v38  ;;  %455 = vmatprep.subr.bf16.mxu1 %v454_v45 }
  0x53   :  { %427 = vmatprep.subr.bf16.mxu0 %v426_v44 }
  0x55   :  { %457 = vmatpush3.bf16.msra.mxu1 %v454_v45 }
  0x56   :  { %429 = vmatpush3.bf16.msra.mxu0 %v426_v44  ;;  %459 = vmatprep.subr.bf16.mxu1 %v458_v49 }
  0x59   :  { %361 = vmatmul.mubr.f32.vlgmr.msra.gmra.mrb[0].mxu0 %v67_v46  ;;  %461 = vmatpush3.bf16.msra.mxu1 %v458_v49 }
 0x12c   :  { %v362_v51 = vpop.f32.mrb[0].mxu0 }
 0x12d   :  { %v163_v52 = vadd.f32 %v362_v51, %v290_v50  ;;  %v157_v53 = vpop.f32.mrb[1].mxu0 }
 0x12e   :  { %v158_v54 = vadd.f32 %v290_v50, %v157_v53 }
 0x12f   :  { %v167_v56 = vmax.f32 %v163_v52, 0.0 }
 0x130   :  { %v166_v55 = vmax.f32 %v158_v54, 0.0 }
 0x132   :  { %395 = vmatprep.mubr.f32.mxu1 %v166_v55 }
 0x133   :  { %396 = vmatmul.mubr.f32.vlgmr.msra.gmra.mrb[0].mxu1 %v167_v56 }
 0x206   :  { %v397_v58 = vpop.f32.mrb[0].mxu1 }
 0x207   :  { %v263_v60 = vadd.f32 %v397_v58, %v291_v57  ;;  %v257_v61 = vpop.f32.mrb[1].mxu1 }
 0x208   :  { %v258_v62 = vadd.f32 %v291_v57, %v257_v61 }
 0x209   :  { %v269_v63 = vmul.f32 %v267_v59, %v263_v60 }
 0x20a   :  { %v268_v0 = vmul.f32 %v267_v59, %v258_v62 }
 0x20b   :  { %271 = vst [vmem:[#allocation9 + $0x8] sm:$0xff] %v269_v63 }
 0x20c   :  { %270 = vst [vmem:[#allocation9] sm:$0xff] %v268_v0 }
 0x20d   :  { %545 = shalt.err (!%p542_p0)
}
 0x20e   :  { %s546_s0 = scalar_lea.hbm %s685_s6, 256 }
 0x20f   :  { %p547_p1 = scmp.ne.s32.totalorder %s685_s6, %s546_s0  ;;  %p550_p2 = scmp.lt.u32.totalorder %s546_s0, %s685_s6 }
 0x211   :  { %p552_p3 = pnand %p550_p2, %p547_p1 }
 0x213   :  { %555 = shalt.err (!%p552_p3)
}
 0x214   :  { %283 = dma.vmem_to_hbm [thread:$0]  %s278_s16, 256, %s685_s6, [#allocation5], %s564_s9, %s564_s9, %s565_s10  }
 0x215   :  { %560 = dma.done.wait [#allocation5], 256  }
 0x216   :  { %561 = vsyncadd [#allocation5], 4294967040 }
 0x217   :  { %287 = vsyncpa [#allocation4], 1 }
 0x218   :  { %288 = vsyncpa [#allocation7], 1 }
 0x219   :  { %289 = vsyncpa [#allocation5], 1 }

</bundles_post_ra>
